<compile_context>
chip_gen: v7x
topology: tpu7x:2x2x1
jax: 0.10.0
libtpu: 0.0.40
codegen_flags: <defaults>
</compile_context>

<pallas_src>
import math

import jax
import jax.numpy as jnp
from jax import lax
from jax.experimental import pallas as pl
from jax.experimental.pallas import tpu as pltpu


# ---------------------------------------------------------------------------
# Kernel
# ---------------------------------------------------------------------------
def _make_kernel(g, tk, scale, compute_dtype, out_is_acc, approx_recip):
    """Build the per-(batch-block, key-tile) kernel body.

    g           : batches packed per grid step (static).
    tk          : key-tile length (static).
    scale       : 1/sqrt(D), applied to the f32 scores.
    compute_dtype: dtype of the MXU operands (bf16 for f32 inputs by default).
    out_is_acc  : if True (f32 I/O) accumulate directly into o_ref, no scratch.
    """
    batched = g > 1

    def kernel(x_ref, o_ref, *scratch):
        acc_ref = o_ref if out_is_acc else scratch[0]
        k_idx = pl.program_id(1)

        @pl.when(k_idx == 0)
        def _init():
            acc_ref[...] = jnp.zeros_like(acc_ref)

        # Key/value tile is a slice of the already-resident query slab
        # (q and kv are the same HBM bytes -> x is read only once).
        start = pl.multiple_of(k_idx * tk, tk)

        if batched:
            q = x_ref[...].astype(compute_dtype)                       # (G, N, D)
            kv = x_ref[:, pl.ds(start, tk), :].astype(compute_dtype)   # (G, tk, D)
            s = jnp.einsum("gqd,gkd->gqk", q, kv,
                           preferred_element_type=jnp.float32)         # (G, N, tk)
            q_axis = 1
        else:
            q = x_ref[...].astype(compute_dtype)                       # (N, D)
            kv = x_ref[pl.ds(start, tk), :].astype(compute_dtype)      # (tk, D)
            s = lax.dot_general(q, kv,
                                dimension_numbers=(((1,), (1,)), ((), ())),
                                preferred_element_type=jnp.float32)    # (N, tk)
            q_axis = 0

        # 1/sqrt(D) applied in f32 on the scores (numerically clean).
        s = s * scale

        # Softmax over the *query* axis, per key column (MaskedSoftmax(dim=1)).
        s = s - jnp.max(s, axis=q_axis, keepdims=True)
        e = jnp.exp(s)
        p = e * pl.reciprocal(jnp.sum(e, axis=q_axis, keepdims=True),
                              approx=approx_recip)
        p = p.astype(compute_dtype)

        # out += probs @ V, accumulated in f32.
        if batched:
            pv = jnp.einsum("gqk,gkd->gqd", p, kv,
                            preferred_element_type=jnp.float32)
        else:
            pv = jnp.dot(p, kv, preferred_element_type=jnp.float32)
        acc_ref[...] += pv

        if not out_is_acc:
            @pl.when(k_idx == pl.num_programs(1) - 1)
            def _finalize():
                o_ref[...] = acc_ref[...].astype(o_ref.dtype)

    return kernel


# ---------------------------------------------------------------------------
# Configuration helpers
# ---------------------------------------------------------------------------
def _vmem_capacity_bytes():
    """Per-core VMEM capacity; conservative 64 MiB (v7x) if the query fails."""
    try:
        cap = int(pltpu.get_tpu_info().vmem_capacity_bytes)
        if cap > 0:
            return cap
    except Exception:
        pass
    return 64 * 1024 * 1024


def _pick_batch_block(B, D):
    """Batches per grid step: aim for ~128 output columns of work per step,
    but keep >= 2 batch-blocks on the 'parallel' axis (v7x megacore)."""
    target = max(1, 128 // D)
    g = 1
    for cand in range(1, min(B, target) + 1):
        if B % cand == 0 and B // cand >= min(2, B):
            g = cand
    return g


def _footprint_bytes(N, D, G, tk, itemsize, out_is_acc):
    x_blk = 2 * G * N * D * itemsize        # resident input block (pipelined)
    out_blk = 2 * G * N * D * itemsize      # resident output block (pipelined)
    acc = 0 if out_is_acc else G * N * D * 4  # f32 accumulator scratch (bf16 I/O)
    temps = 2 * G * N * tk * 4              # ~2 live f32 (N, tk) softmax temps
    casts = 2 * G * (N + tk) * D            # bf16 operand copies for the MXU
    return x_blk + out_blk + acc + temps + casts


def _pick_key_tile(N, D, G, dtype, budget, out_is_acc):
    """Largest key tile that divides N, respects the dtype's native sublane
    packing, and fits the generation-aware VMEM budget."""
    itemsize = jnp.dtype(dtype).itemsize
    min_tk = {1: 32, 2: 16}.get(itemsize, 8)
    candidates = [N] + [t for t in (4096, 2048, 1024, 512, 256, 128, 64, 32, 16, 8)
                        if min_tk <= t < N and N % t == 0]
    for tk in candidates:
        if _footprint_bytes(N, D, G, tk, itemsize, out_is_acc) <= budget:
            return tk
    # TODO(synk): fall back to query tiling (needs a cross-q-tile softmax
    #             carry) instead of failing for very large N*D.
    raise ValueError(
        f"self_attention: resident (N={N}, D={D}, G={G}) slabs do not fit the "
        f"VMEM budget ({budget} bytes); query tiling is not implemented.")


# ---------------------------------------------------------------------------
# Public wrapper
# ---------------------------------------------------------------------------
def self_attention(x, *, tk=None, batch_block=None, use_bf16_matmul=True,
                   approx_recip=True, vmem_limit_bytes=None):
    """Self-attention with softmax over the query axis (dim=1). x: (B, N, D)."""
    B, N, D = x.shape
    dtype = jnp.dtype(x.dtype)
    itemsize = dtype.itemsize

    G = _pick_batch_block(B, D) if batch_block is None else int(batch_block)
    assert B % G == 0, "batch_block must divide the batch size"

    # Generation-aware VMEM budgeting (v5e/v6e: 128 MiB, v7x: 64 MiB).
    cap = _vmem_capacity_bytes()
    budget = min(int(cap * 0.70), 56 * 1024 * 1024)
    if vmem_limit_bytes is None:
        vmem_limit_bytes = min(int(cap * 0.75), 96 * 1024 * 1024)

    out_is_acc = dtype == jnp.dtype(jnp.float32)
    if tk is None:
        tk = _pick_key_tile(N, D, G, dtype, budget, out_is_acc)
    assert N % tk == 0, "key tile must divide the sequence length"
    num_k = N // tk

    compute_dtype = (jnp.bfloat16
                     if (use_bf16_matmul and dtype == jnp.dtype(jnp.float32))
                     else dtype)
    scale = 1.0 / math.sqrt(D)

    kernel = _make_kernel(G, tk, scale, compute_dtype, out_is_acc, approx_recip)

    if G > 1:
        blk = (G, N, D)
        acc_shape = (G, N, D)
    else:
        blk = (pl.Squeezed(), N, D)
        acc_shape = (N, D)

    scratch = [] if out_is_acc else [pltpu.VMEM(acc_shape, jnp.float32)]

    grid_spec = pltpu.PrefetchScalarGridSpec(
        num_scalar_prefetch=0,
        grid=(B // G, num_k),
        in_specs=[
            # Single resident x block per batch-block (q AND kv), held across k.
            pl.BlockSpec(blk, lambda b, k: (b, 0, 0)),
        ],
        out_specs=pl.BlockSpec(blk, lambda b, k: (b, 0, 0)),
        scratch_shapes=scratch,
    )

    cost = pl.CostEstimate(
        flops=4 * B * N * N * D,            # two (N x N x D) matmuls per batch
        transcendentals=B * N * N,          # exp
        bytes_accessed=2 * B * N * D * itemsize,   # x read once + out written once
    )

    return pl.pallas_call(
        kernel,
        out_shape=jax.ShapeDtypeStruct((B, N, D), dtype),
        grid_spec=grid_spec,
        compiler_params=pltpu.CompilerParams(
            dimension_semantics=("parallel", "arbitrary"),
            vmem_limit_bytes=int(vmem_limit_bytes),
        ),
        cost_estimate=cost,
    )(x)


# ---------------------------------------------------------------------------
# Pure-JAX reference (mirrors the PyTorch module, computed in f32)
# ---------------------------------------------------------------------------
def _reference(x):
    xf = x.astype(jnp.float32)
    d = x.shape[-1]
    s = jnp.einsum("bqd,bkd->bqk", xf, xf) / math.sqrt(d)
    p = jax.nn.softmax(s, axis=1)           # dim=1 (query axis), as in the module
    return jnp.einsum("bqk,bkd->bqd", p, xf)


if __name__ == "__main__":
    key = jax.random.PRNGKey(0)

    # 1a) Module-docstring shapes, f32, exact path (f32 MXU, exact reciprocal).
    B, N, D = 2, 8, 32
    x = jax.random.normal(key, (B, N, D), dtype=jnp.float32)
    out = jax.block_until_ready(
        self_attention(x, use_bf16_matmul=False, approx_recip=False))
    ref = _reference(x)
    assert out.shape == (B, N, D)
    assert jnp.allclose(out, ref, atol=1e-4, rtol=1e-4), "exact f32 mismatch"

    # 1b) Same shapes, default fast path (bf16 MXU operands + approx recip).
    out_fast = jax.block_until_ready(self_attention(x))
    assert jnp.allclose(out_fast, ref, atol=3e-2, rtol=3e-2), "fast f32 mismatch"

    # 2) Larger sequence, multiple key tiles: f32 output accumulates in-place.
    x2 = jax.random.normal(jax.random.PRNGKey(1), (2, 256, 64), dtype=jnp.float32)
    out2 = jax.block_until_ready(self_attention(x2, tk=128))
    assert jnp.allclose(out2, _reference(x2), atol=3e-2, rtol=3e-2), \
        "tiled f32 mismatch"

    # 3) bf16 I/O: f32 scratch accumulator path, single and multiple key tiles.
    xb = x.astype(jnp.bfloat16)
    outb = jax.block_until_ready(self_attention(xb))
    assert jnp.allclose(outb.astype(jnp.float32), _reference(xb),
                        atol=1e-1, rtol=1e-1), "bf16 mismatch"
    xb2 = x2.astype(jnp.bfloat16)
    outb2 = jax.block_until_ready(self_attention(xb2, tk=128))
    assert jnp.allclose(outb2.astype(jnp.float32), _reference(xb2),
                        atol=1e-1, rtol=1e-1), "tiled bf16 mismatch"

    # 4) Batch-packed path: B=8, D=32 -> G=4 batches per grid step, 2 key tiles.
    x3 = jax.random.normal(jax.random.PRNGKey(2), (8, 128, 32), dtype=jnp.float32)
    out3 = jax.block_until_ready(self_attention(x3, tk=64))
    assert jnp.allclose(out3, _reference(x3), atol=3e-2, rtol=3e-2), \
        "batched (G>1) mismatch"

    print("KERNEL_OK")
</pallas_src>

<mosaic_0001>
module attributes {stable_mosaic.version = 11 : i64} {
  func.func @kernel(%arg0: i32, %arg1: i32, %arg2: memref<1x8x32xf32, #tpu.memory_space<vmem>>, %arg3: memref<1x8x32xf32, #tpu.memory_space<vmem>>) attributes {dimension_semantics = [#tpu.dimension_semantics<parallel>, #tpu.dimension_semantics<arbitrary>], iteration_bounds = array<i64: 2, 1>, scalar_prefetch = 0 : i64, scratch_operands = 0 : i64, tpu.core_type = #tpu.core_type<tc>, window_params = [{transform_indices = @transform_0, window_bounds = array<i64: 1, 8, 32>}, {transform_indices = @transform_1, window_bounds = array<i64: 1, 8, 32>}]} {
    %c0_i32 = arith.constant 0 : i32
    %0 = arith.cmpi eq, %arg1, %c0_i32 : i32
    %1 = arith.extui %0 : i1 to i32
    %c0_i32_0 = arith.constant 0 : i32
    %2 = arith.cmpi ne, %1, %c0_i32_0 : i32
    scf.if %2 {
      %cst_15 = arith.constant 0.000000e+00 : f32
      %30 = vector.broadcast %cst_15 : f32 to vector<8x32xf32>
      %c0_16 = arith.constant 0 : index
      %c0_17 = arith.constant 0 : index
      %c0_18 = arith.constant 0 : index
      %31 = vector.load %arg3[%c0_16, %c0_17, %c0_18] : memref<1x8x32xf32, #tpu.memory_space<vmem>>, vector<1x8x32xf32>
      %32 = vector.shape_cast %31 : vector<1x8x32xf32> to vector<8x32xf32>
      %33 = vector.shape_cast %30 : vector<8x32xf32> to vector<1x8x32xf32>
      tpu.vector_store %arg3[%c0_16, %c0_17, %c0_18], %33 {strides = array<i32>} : memref<1x8x32xf32, #tpu.memory_space<vmem>>, vector<1x8x32xf32>,
    } else {
    }
    %c8_i32 = arith.constant 8 : i32
    %3 = arith.muli %arg1, %c8_i32 : i32
    %4 = tpu.assume_multiple %3, 8 : i32
    %c0 = arith.constant 0 : index
    %c0_1 = arith.constant 0 : index
    %c0_2 = arith.constant 0 : index
    %5 = vector.load %arg2[%c0, %c0_1, %c0_2] : memref<1x8x32xf32, #tpu.memory_space<vmem>>, vector<1x8x32xf32>
    %6 = vector.shape_cast %5 : vector<1x8x32xf32> to vector<8x32xf32>
    %c0_3 = arith.constant 0 : index
    %7 = arith.index_cast %4 : i32 to index
    %c0_4 = arith.constant 0 : index
    %8 = vector.load %arg2[%c0_3, %7, %c0_4] : memref<1x8x32xf32, #tpu.memory_space<vmem>>, vector<1x8x32xf32>
    %9 = vector.shape_cast %8 : vector<1x8x32xf32> to vector<8x32xf32>
    %cst = arith.constant dense<0.000000e+00> : vector<8x8xf32>
    %10 = tpu.matmul %6, %9, %cst {dimension_numbers = #tpu.dot_dimension_numbers<[1], [1], [0], [0], [0, 0, 1, 0], [], []>} : vector<8x32xf32>, vector<8x32xf32>, vector<8x8xf32> -> vector<8x8xf32>
    %cst_5 = arith.constant 0.176776692 : f32
    %11 = vector.broadcast %cst_5 : f32 to vector<8x8xf32>
    %12 = arith.mulf %10, %11 : vector<8x8xf32>
    %cst_6 = arith.constant dense<0xFF800000> : vector<8xf32>
    %13 = vector.multi_reduction <maximumf>, %12, %cst_6 [0] : vector<8x8xf32> to vector<8xf32>
    %14 = vector.shape_cast %13 : vector<8xf32> to vector<1x8xf32>
    %15 = vector.broadcast %14 : vector<1x8xf32> to vector<8x8xf32>
    %16 = arith.subf %12, %15 : vector<8x8xf32>
    %17 = math.exp %16 : vector<8x8xf32>
    %cst_7 = arith.constant dense<0.000000e+00> : vector<8xf32>
    %18 = vector.multi_reduction <add>, %17, %cst_7 [0] : vector<8x8xf32> to vector<8xf32>
    %19 = vector.shape_cast %18 : vector<8xf32> to vector<1x8xf32>
    %20 = tpu.reciprocal %19 : vector<1x8xf32> -> vector<1x8xf32>
    %21 = vector.broadcast %20 : vector<1x8xf32> to vector<8x8xf32>
    %22 = arith.mulf %17, %21 : vector<8x8xf32>
    %cst_8 = arith.constant dense<0.000000e+00> : vector<8x32xf32>
    %23 = tpu.matmul %22, %9, %cst_8 {dimension_numbers = #tpu.dot_dimension_numbers<[1], [0], [0], [1], [0, 0, 1, 1], [], []>} : vector<8x8xf32>, vector<8x32xf32>, vector<8x32xf32> -> vector<8x32xf32>
    %c0_9 = arith.constant 0 : index
    %c0_10 = arith.constant 0 : index
    %c0_11 = arith.constant 0 : index
    %24 = vector.load %arg3[%c0_9, %c0_10, %c0_11] : memref<1x8x32xf32, #tpu.memory_space<vmem>>, vector<1x8x32xf32>
    %25 = vector.shape_cast %24 : vector<1x8x32xf32> to vector<8x32xf32>
    %26 = arith.addf %25, %23 : vector<8x32xf32>
    %c0_12 = arith.constant 0 : index
    %c0_13 = arith.constant 0 : index
    %c0_14 = arith.constant 0 : index
    %27 = vector.load %arg3[%c0_12, %c0_13, %c0_14] : memref<1x8x32xf32, #tpu.memory_space<vmem>>, vector<1x8x32xf32>
    %28 = vector.shape_cast %27 : vector<1x8x32xf32> to vector<8x32xf32>
    %29 = vector.shape_cast %26 : vector<8x32xf32> to vector<1x8x32xf32>
    tpu.vector_store %arg3[%c0_12, %c0_13, %c0_14], %29 {strides = array<i32>} : memref<1x8x32xf32, #tpu.memory_space<vmem>>, vector<1x8x32xf32>,
    return
  }
  func.func @transform_0(%arg0: i32, %arg1: i32) -> (i32, i32, i32) {
    %c0_i32 = arith.constant 0 : i32
    %c0_i32_0 = arith.constant 0 : i32
    %c0_i32_1 = arith.constant 0 : i32
    return %arg0, %c0_i32, %c0_i32_0 : i32, i32, i32
  }
  func.func @transform_1(%arg0: i32, %arg1: i32) -> (i32, i32, i32) {
    %c0_i32 = arith.constant 0 : i32
    %c0_i32_0 = arith.constant 0 : i32
    %c0_i32_1 = arith.constant 0 : i32
    return %arg0, %c0_i32, %c0_i32_0 : i32, i32, i32
  }
}

</mosaic_0001>

<bundles_post_ra>
// kernel: tpu_custom_call.1
= control target key start
LH: loop header
LB: loop body
LE: loop exit
PB: predicated region body
PF: predicated region fallthrough
CT: control target
= control target key end

     0   :  { %6 = vsyncpa [#allocation3], 0  ;;  %s833_s0 = inlined_call_operand.hbm [shape: f32[2,8,32], index: 0, kind: input, shape index: {}]   ;;  %s834_s1 = inlined_call_operand.hbm [shape: f32[2,8,32], index: 1, kind: output, shape index: {}]  }
   0x1   :  { %8 = vsyncpa [#allocation3 + $0x1], 0 }
   0x2   :  { %9 = vsyncpa [#allocation4], 0 }
   0x3   :  { %11 = vsyncpa [#allocation4 + $0x1], 0  ;;  %s648_s6 = smov 0   ;;  %s650_s7 = smov 0  }
   0x4   :  { %s652_s8 = smov 0   ;;  %s654_s9 = smov 0  }
   0x5   :  { %s656_s10 = smov 0   ;;  %s658_s11 = smov 0  }
   0x6 LB: > { %s422_s12 = sadd.s32 4294967295, %s632_s11   ;;  %s423_s13 = sadd.s32 4294967294, %s632_s11   ;;  %s632_s11 = sphi %s658_s11, %s17_s11   ;;  %s628_s10 = sphi %s656_s10, %s850_s10   ;;  %s624_s9 = sphi %s654_s9, %s849_s9   ;;  %s620_s8 = sphi %s652_s8, %s848_s8   ;;  %s616_s7 = sphi %s650_s7, %s847_s7   ;;  %s612_s6 = sphi %s648_s6, %s846_s6  }
   0x7   : > { %s29_s14 = sadd.s32 1, %s628_s10  ;;  %s36_s15 = sadd.s32 1, %s620_s8 }
   0x8   : > { %p31_p0 = scmp.ge.s32.totalorder %s29_s14, 2  ;;  %p43_p1 = scmp.ne.s32.totalorder %s620_s8, %s616_s7 }
   0x9   : > { %p44_p2 = scmp.eq.s32.totalorder %s632_s11, 0  ;;  %p49_p3 = scmp.ne.s32.totalorder %s616_s7, %s612_s6 }
   0xa   : > { %s852_s14 = smov (%p31_p0, %s29_s14), 0  ;;  %p50_p5 = scmp.eq.s32.totalorder %s422_s12, 0 }
   0xb   : > { %p689_p4 = por %p44_p2, %p43_p1  ;;  %s33_s17 = ssub.s32 %s628_s10, %s852_s14 }
   0xc   : > { %p73_p6 = scmp.eq.s32.totalorder %s422_s12, 1  ;;  %p34_p7 = scmp.eq.s32.totalorder %s33_s17, 0 }
   0xd   : > { %p695_p8 = por %p50_p5, %p49_p3  ;;  %p79_p10 = scmp.eq.s32.totalorder %s423_s13, 1 }
   0xe   : > { %p699_p9 = por %p73_p6, %p43_p1  ;;  %p464_p13 = scmp.lt.s32.totalorder %s632_s11, 2 }
   0xf   : > { %s704_s20 = scalar_select %p34_p7, %s620_s8, %s36_s15  }
  0x10   : > { %s838_s19 = scalar_select %p699_p9, 1, 0 }
  0x11   : > { %p706_p11 = por %p79_p10, %p49_p3  ;;  %s99_s22 = sand.u32 1, %s620_s8  }
  0x12   : > { %s426_s23 = sshll.u32 %s99_s22, 3  ;;  %s427_s24 = sshll.u32 %s628_s10, 7 }
  0x13   : > { %s839_s21 = scalar_select %p706_p11, 1, 0 }
  0x14   : > { %s717_s27 = scalar_lea.hbm %s833_s0, %s427_s24  ;;  %s103_s28 = scalar_lea.vmem [#allocation2], %s426_s23 }
  0x15   : > { %s110_s29 = sshll.u32 %s103_s28, 4  ;;  %p723_p0 = pnand %p464_p13, %p689_p4  ;;  %s719_s29 = int_to_ptr.vmem [resolvable:$true] %s110_s29 }
  0x16   : > { %s100_s2 = scalar_lea.sflag [#allocation3], %s99_s22  ;;  %s520_s3 = scalar_lea.hbm %s717_s27, 128 }
  0x17   : > { %p521_p3 = scmp.ne.s32.totalorder %s717_s27, %s520_s3  ;;  %p522_p5 = pneg %p723_p0 }
  0x18   : > { %s525_s12 = scalar_lea.hbm %s833_s0, 256  ;;  %p526_p4 = scmp.lt.u32.totalorder %s717_s27, %s833_s0 }
  0x19   : > { %p523_p6 = pnand %p522_p5, %p521_p3  ;;  %p527_p10 = scmp.lt.u32.totalorder %s525_s12, %s520_s3 }
  0x1a   : > { %p529_p12 = scmp.lt.u32.totalorder %s520_s3, %s717_s27 }
  0x1b   : > { %p524_p7 = pneg %p523_p6  ;;  %p528_p13 = por %p527_p10, %p526_p4 }
  0x1d   : > { %p530_p1 = por %p529_p12, %p528_p13 }
  0x1f   : > { %p531_p2 = pnand %p530_p1, %p524_p7 }
  0x21   : > { %534 = shalt.err (!%p531_p2)
}
  0x22   : > { %s535_s16 = scalar_lea.vmem %s719_s29, 128  ;;  %s634_s17 = smov [#allocation2]  }
  0x23   : > { %p536_p3 = scmp.ne.s32.totalorder %s719_s29, %s535_s16  ;;  %s540_s22 = sshll.u32 %s634_s17, 4  ;;  %s541_s22 = int_to_ptr.vmem [resolvable:$false] %s540_s22 }
  0x24   : > { %s542_s23 = scalar_lea.vmem %s541_s22, 256  ;;  %p543_p9 = scmp.lt.s32.totalorder %s719_s29, %s541_s22 }
  0x25   : > { %p538_p6 = pnand %p536_p3, %p522_p5  ;;  %p544_p4 = scmp.lt.s32.totalorder %s542_s23, %s535_s16 }
  0x27   : > { %p539_p11 = pneg %p538_p6  ;;  %p545_p10 = por %p544_p4, %p543_p9 }
  0x29   : > { %p546_p12 = pnand %p545_p10, %p539_p11 }
  0x2b   : > { %549 = shalt.err (!%p546_p12)
}
  0x2c   : > { %459 = dma.hbm_to_vmem [thread:$0]  (!%p723_p0), %s717_s27, 128, %s719_s29, %s100_s2  }
  0x2d   : > { %p841_p1 = scmp.lt.s32.totalorder %s632_s11, 3  ;;  %p842_p2 = scmp.ge.s32.totalorder %s632_s11, 1 }
  0x2f   : > { %p116_p5 = pnand %p842_p2, %p841_p1 }
  0x30   : > { %s759_s24 = sand.u32 (!%p116_p5), 1, %s616_s7  }
  0x31   : > { %119 = sbr.rel (%p116_p5) target bundleno = 559 (0x22f), region = 24  ;;  %s429_s25 = sshll.u32 (!%p116_p5), %s759_s24, 3 }
  0x32   : > { %s122_s26 = scalar_lea.sflag (!%p116_p5), [#allocation3], %s759_s24  ;;  %s125_s28 = scalar_lea.vmem (!%p116_p5), [#allocation2], %s429_s25 }
  0x38   : > { %603 = dma.done.wait (%p695_p8), %s122_s26, 128  }
  0x39   : > { %605 = vsyncadd (%p695_p8), %s122_s26, 4294967168  ;;  %v635_v0 = vmov 0.0   ;;  %vm636_vm0 = vmmov 0   ;;  %vm148_vm1 = vcmask 261120   ;;  %v153_v1 = vld [vmem:[%s125_s28] sm:$0xff]  ;;  %s769_s27 = scalar_lea.vmem [#allocation5], %s429_s25 }
  0x3a   : > { %442 = vmatprep.subr.mxu0 %v635_v0  ;;  %444 = vmatprep.mubr.msk.f32.mxu0 %vm636_vm0, %v635_v0  ;;  %149 = vst.msk [vmem:[%s769_s27] sm:$0xff] %vm148_vm1, %v635_v0  ;;  %vm232_vm2 = vcmask 64512   ;;  %s435_s18 = sshll.u32 %s624_s9, 7  ;;  %s342_s29 = sshll.u32 %s769_s27, 4  ;;  %s784_s29 = int_to_ptr.vmem [resolvable:$true] %s342_s29 }
  0x3b   : > { %447 = vmatprep.subr.mxu1 %v635_v0  ;;  %449 = vmatprep.mubr.msk.f32.mxu1 %vm636_vm0, %v635_v0  ;;  %s782_s3 = scalar_lea.hbm %s834_s1, %s435_s18  ;;  %s329_s4 = scalar_lea.sflag [#allocation4], %s759_s24 }
  0x3c   : > { %443 = vmatpush3.xpose.msk.msra.mxu0 %vm148_vm1, %v153_v1  ;;  %448 = vmatpush3.msra.mxu1 %v153_v1  ;;  %s550_s5 = scalar_lea.vmem %s784_s29, 128  ;;  %p843_p9 = scmp.ne.s32.totalorder %s838_s19, 0 }
  0x3d   : > { %p551_p8 = scmp.ne.s32.totalorder %s784_s29, %s550_s5  ;;  %s637_s9 = smov [#allocation5]  }
  0x3e   : > { %s554_s12 = sshll.u32 %s637_s9, 4  ;;  %s555_s12 = int_to_ptr.vmem [resolvable:$false] %s554_s12 }
  0x3f   : > { %445 = vmatmul.mubr.msk.f32.vlgmr.msra.gmra.mrb[0].mxu0 %vm148_vm1, %v153_v1  ;;  %p552_p11 = pnand %p551_p8, %p843_p9  ;;  %s556_s13 = scalar_lea.vmem %s555_s12, 256 }
  0x40   : > { %p557_p7 = scmp.lt.s32.totalorder %s784_s29, %s555_s12  ;;  %p558_p13 = scmp.lt.s32.totalorder %s556_s13, %s550_s5 }
  0x41   : > { %v325_v24 = vld [vmem:[%s769_s27] sm:$0xff]  ;;  %p553_p0 = pneg %p552_p11 }
  0x42   : > { %p559_p3 = por %p558_p13, %p557_p7 }
  0x44   : > { %p560_p6 = pnand %p559_p3, %p553_p0 }
 0x112   : > { %v227_v2 = vpop.f32.mrb[0].mxu0 }
 0x113   : > { %v231_v3 = vmul.f32 0.17677669, %v227_v2  ;;  %v446_v4 = vpop.f32.mrb[1].mxu0 }
 0x115   : > { %v233_v5 = vsel %vm232_vm2, %v231_v3, -inf }
 0x116   : > { %v234_v6 = vrot.slane %v233_v5, 4 }
 0x118   : > { %v235_v7 = vmax.f32 %v233_v5, %v234_v6 }
 0x11a   : > { %v236_v8 = vrot.slane %v235_v7, 2 }
 0x11c   : > { %v237_v9 = vmax.f32 %v235_v7, %v236_v8 }
 0x11e   : > { %v238_v10 = vrot.slane %v237_v9, 1 }
 0x120   : > { %v239_v11 = vmax.f32 %v237_v9, %v238_v10 }
 0x122   : > { %v240_v12 = vsub.f32 %v231_v3, %v239_v11 }
 0x124   : > { %v241_v13 = vmul.f32 1.442695, %v240_v12 }
 0x126   : > { %516 = vpow2.f32 %v241_v13 }
 0x130   : > { %v517_v14 = vpop.eup %516 }
 0x131   : > { %v243_v15 = vsel %vm232_vm2, %v517_v14, 0.0 }
 0x132   : > { %v244_v16 = vrot.slane %v243_v15, 4 }
 0x134   : > { %v245_v17 = vadd.f32 %v244_v16, %v243_v15 }
 0x136   : > { %v246_v18 = vrot.slane %v245_v17, 2 }
 0x138   : > { %v247_v19 = vadd.f32 %v246_v18, %v245_v17 }
 0x13a   : > { %v248_v20 = vrot.slane %v247_v19, 1 }
 0x13c   : > { %v249_v21 = vadd.f32 %v248_v20, %v247_v19 }
 0x13e   : > { %518 = vrcp.f32 %v249_v21 }
 0x148   : > { %v519_v22 = vpop.eup %518 }
 0x149   : > { %v251_v23 = vmul.f32 %v519_v22, %v517_v14 }
 0x14b   : > { %450 = vmatmul.mubr.msk.f32.vlgmr.msra.gmra.mrb[0].mxu1 %vm232_vm2, %v251_v23 }
 0x21e   : > { %v321_v25 = vpop.f32.mrb[0].mxu1 }
 0x21f   : > { %v326_v26 = vadd.f32 %v325_v24, %v321_v25  ;;  %v451_v27 = vpop.f32.mrb[1].mxu1 }
 0x221   : > { %327 = vst.msk [vmem:[%s769_s27] sm:$0xff] %vm148_vm1, %v326_v26 }
 0x222   : > { %563 = shalt.err (!%p560_p6)
}
 0x223   : > { %s564_s15 = scalar_lea.hbm %s782_s3, 128  ;;  %s568_s22 = scalar_lea.hbm %s834_s1, 256 }
 0x224   : > { %p565_p4 = scmp.ne.s32.totalorder %s782_s3, %s564_s15  ;;  %p569_p1 = scmp.lt.u32.totalorder %s782_s3, %s834_s1 }
 0x225   : > { %p570_p2 = scmp.lt.u32.totalorder %s568_s22, %s564_s15  ;;  %p572_p8 = scmp.lt.u32.totalorder %s564_s15, %s782_s3 }
 0x226   : > { %p566_p10 = pnand %p565_p4, %p843_p9 }
 0x227   : > { %p571_p5 = por %p570_p2, %p569_p1 }
 0x228   : > { %p567_p12 = pneg %p566_p10 }
 0x229   : > { %p573_p11 = por %p572_p8, %p571_p5 }
 0x22b   : > { %p574_p0 = pnand %p573_p11, %p567_p12 }
 0x22d   : > { %577 = shalt.err (!%p574_p0)
}
 0x22e   : > { %454 = dma.vmem_to_hbm [thread:$0]  (%p843_p9), %s784_s29, 128, %s782_s3, %s329_s4  }
 0x22f PF: > { %s354_s25 = sand.u32 1, %s612_s6   ;;  %p844_p7 = scmp.ne.s32.totalorder %s839_s21, 0 }
 0x230   : > { %p845_p13 = scmp.ge.s32.totalorder %s632_s11, 2  ;;  %s355_s26 = scalar_lea.sflag [#allocation4], %s354_s25 }
 0x232   : > { %p461_p3 = pnand %p845_p13, %p844_p7 }
 0x234   : > { %607 = dma.done.wait (!%p461_p3), %s355_s26, 128  }
 0x235   : > { %609 = vsyncadd (!%p461_p3), %s355_s26, 4294967168  ;;  %s17_s11 = sadd.s32 1, %s632_s11   ;;  %s846_s6 = smov %s616_s7 }
 0x236   : > { %p14_p6 = scmp.ge.s32.totalorder %s17_s11, 4   ;;  %s847_s7 = smov %s620_s8 }
 0x237   : > { %s848_s8 = smov %s704_s20  ;;  %s849_s9 = smov %s628_s10 }
 0x238   : > { %s850_s10 = smov %s852_s14  ;;  %16 = sbr.rel (!%p14_p6) target bundleno = 6 (0x6), region = 74 }
 0x23f   :  { %360 = vsyncpa [#allocation3], 1 }
 0x240   :  { %362 = vsyncpa [#allocation3 + $0x1], 1 }
 0x241   :  { %363 = vsyncpa [#allocation4], 1 }
 0x242   :  { %365 = vsyncpa [#allocation4 + $0x1], 1 }

</bundles_post_ra>
